<compile_context>
chip_gen: v7x
topology: tpu7x:2x2x1
jax: 0.10.0
libtpu: 0.0.40
codegen_flags: <defaults>
</compile_context>

<pallas_src>
import jax
import jax.numpy as jnp
from jax.experimental import pallas as pl
from jax.experimental.pallas import tpu as pltpu


def ffn_kernel(x_ref, w1_ref, b1_ref, w2_ref, b2_ref, o_ref):
    # Layer 1: Linear(inputdim -> hidden) + ReLU, f32 accumulate on the MXU.
    h = jnp.dot(x_ref[...], w1_ref[...], preferred_element_type=jnp.float32)
    h = jnp.maximum(h + b1_ref[...], 0.0)            # (TILE_B, H) + (1, H) broadcast, f32
    # Dropout: identity in eval mode (PyTorch nn.Dropout is a no-op at inference).
    # TODO(synk): training-mode dropout (pltpu.prng_random_bits mask + 1/(1-p) scaling).
    # Layer 2: Linear(hidden -> O). Cast h to the operand dtype of w2 (no-op for f32).
    y = jnp.dot(h.astype(w2_ref.dtype), w2_ref[...],
                preferred_element_type=jnp.float32)
    o_ref[...] = (y + b2_ref[...]).astype(o_ref.dtype)


def _round_up(x, m):
    return (x + m - 1) // m * m


def _default_operand_dtype():
    """bf16 MXU operands on v6e/v7x; f32 on v5e and older (no bf16 VPU path)."""
    try:
        kind = jax.devices()[0].device_kind.lower()
    except Exception:
        return jnp.float32
    if "tpu" not in kind:
        return jnp.float32
    for old in ("v2", "v3", "v4", "v5"):
        if old in kind:
            return jnp.float32
    return jnp.bfloat16


def ffn_forward(x, w1, b1, w2, b2, *, tile_b=512, operand_dtype=None):
    """Eval-mode forward: Linear -> ReLU -> Dropout(identity) -> Linear.

    x  : (B, D_in)  float32 (cast to operand_dtype for the MXU)
    w1 : (D_in, H)   b1 : (H,) or (1, H)      (PyTorch-style 1-D biases accepted)
    w2 : (H, O)      b2 : (O,) or (1, O)
    returns (B, O) float32.

    Batch is tiled over a 1-D "parallel" grid; weights/biases use constant index_maps
    so they are DMA'd once and stay resident in VMEM across grid steps. For best
    per-call cost, pre-cast w1/w2 to the operand dtype once outside this function.
    """
    B, D_in = x.shape
    H = w1.shape[-1]
    O = w2.shape[-1]

    if operand_dtype is None:
        operand_dtype = _default_operand_dtype()
    op_dtype = jnp.dtype(operand_dtype)
    op_size = op_dtype.itemsize

    # MXU operands (bf16 halves HBM read traffic on v6e/v7x); epilogue stays f32.
    x_in = x.astype(op_dtype)
    w1_in = w1.astype(op_dtype)
    w2_in = w2.astype(op_dtype)
    b1_in = jnp.asarray(b1, jnp.float32).reshape(1, H)
    b2_in = jnp.asarray(b2, jnp.float32).reshape(1, O)

    # --- batch tiling: multiple of 8; >= 2 grid steps when B >= 16 (v7x megacore) ---
    b8 = _round_up(B, 8)
    tile = max(8, min(_round_up(tile_b, 8), b8))
    nsteps = pl.cdiv(b8, tile)
    if b8 >= 16:
        nsteps = max(nsteps, 2)          # let v7x's two TensorCores split the batch
    tile = _round_up(pl.cdiv(b8, nsteps), 8)   # equalize tiles, minimize padding
    B_pad = _round_up(B, tile)
    if B_pad != B:
        # Padded rows compute ReLU(b1) @ w2 + b2 garbage; they are sliced off below and
        # must not be reduced over by any consumer of the raw padded output.
        x_in = jnp.pad(x_in, ((0, B_pad - B), (0, 0)))
    grid = (B_pad // tile,)

    # Explicit VMEM budget: 2x streamed x/out tiles + weights (2x to also cover the
    # double-buffered fallback), with headroom.  Capped at v7x's 64 MiB physical VMEM.
    weight_bytes = (w1_in.size + w2_in.size) * op_size + (b1_in.size + b2_in.size) * 4
    stream_bytes = 2 * tile * D_in * op_size + 2 * tile * O * 4
    vmem_limit = min(64 << 20,
                     max(4 << 20, int(1.25 * (2 * weight_bytes + stream_bytes)) + (1 << 20)))

    cost = pl.CostEstimate(
        flops=2 * B_pad * (D_in * H + H * O),
        transcendentals=0,
        bytes_accessed=(x_in.size * op_size
                        + (w1_in.size + w2_in.size) * op_size
                        + (b1_in.size + b2_in.size) * 4
                        + B_pad * O * 4),
    )

    def build(single_buffer_weights):
        if single_buffer_weights:
            def const_spec(shape):
                # Constant-index blocks are DMA'd once; single-buffer them so they do
                # not pay the default 2x VMEM for double buffering.
                return pl.BlockSpec(shape, lambda i: (0, 0),
                                    pipeline_mode=pl.Buffered(1))
        else:
            def const_spec(shape):
                return pl.BlockSpec(shape, lambda i: (0, 0))
        return pl.pallas_call(
            ffn_kernel,
            out_shape=jax.ShapeDtypeStruct((B_pad, O), jnp.float32),
            grid=grid,
            in_specs=[
                pl.BlockSpec((tile, D_in), lambda i: (i, 0)),   # x: streamed per tile
                const_spec((D_in, H)),                          # w1: resident
                const_spec((1, H)),                             # b1: resident
                const_spec((H, O)),                             # w2: resident
                const_spec((1, O)),                             # b2: resident
            ],
            out_specs=pl.BlockSpec((tile, O), lambda i: (i, 0)),  # unpadded O (masked vst)
            compiler_params=pltpu.CompilerParams(
                dimension_semantics=("parallel",),
                vmem_limit_bytes=vmem_limit),
            cost_estimate=cost,
        )

    try:
        out = build(True)(x_in, w1_in, b1_in, w2_in, b2_in)
    except Exception:
        # Fallback for jax builds where Buffered(1) on a pallas_call BlockSpec is not
        # supported: weights are then double-buffered (still within the VMEM budget).
        out = build(False)(x_in, w1_in, b1_in, w2_in, b2_in)

    # Strip batch padding only when it was actually added (no per-call slice otherwise).
    return out if B_pad == B else out[:B]


if __name__ == "__main__":
    # Synthetic config mirroring ARGS:
    #   numberOfInputCUIInts (= inputdim) = 32
    #   hiddenDimSize                     = 32
    #   numberOfOutputCodes               = 16
    #   dropOut                           = 0.5 (identity at inference)
    batch, inputdim, hidden_dim, out_dim = 8, 32, 32, 16

    key = jax.random.PRNGKey(0)
    kx, kw1, kb1, kw2, kb2 = jax.random.split(key, 5)

    x = jax.random.normal(kx, (batch, inputdim), dtype=jnp.float32)

    # PyTorch nn.Linear default init: U(-1/sqrt(fan_in), 1/sqrt(fan_in)); 1-D biases
    # exactly like nn.Linear stores them (wrapper reshapes internally).
    bound1 = 1.0 / (inputdim ** 0.5)
    w1 = jax.random.uniform(kw1, (inputdim, hidden_dim), jnp.float32, -bound1, bound1)
    b1 = jax.random.uniform(kb1, (hidden_dim,), jnp.float32, -bound1, bound1)

    bound2 = 1.0 / (hidden_dim ** 0.5)
    w2 = jax.random.uniform(kw2, (hidden_dim, out_dim), jnp.float32, -bound2, bound2)
    b2 = jax.random.uniform(kb2, (out_dim,), jnp.float32, -bound2, bound2)

    # Plain-JAX reference (eval mode: dropout is identity).
    ref = jnp.maximum(x @ w1 + b1, 0.0) @ w2 + b2

    # 1) f32-operand path (bit-faithful on every TPU generation).
    out_f32 = ffn_forward(x, w1, b1, w2, b2, operand_dtype=jnp.float32)
    jax.block_until_ready(out_f32)
    assert out_f32.shape == (batch, out_dim)
    assert jnp.allclose(out_f32, ref, atol=1e-5, rtol=1e-5)

    # 2) Auto path (bf16 operands on v6e/v7x, f32 on v5e and older) -- loose tolerance
    #    to accommodate bf16 operand rounding.
    out_auto = ffn_forward(x, w1, b1, w2, b2)
    jax.block_until_ready(out_auto)
    assert out_auto.shape == (batch, out_dim)
    assert jnp.allclose(out_auto, ref, atol=1e-1, rtol=1e-1)

    print("KERNEL_OK")
</pallas_src>

<mosaic_0001>
module attributes {stable_mosaic.version = 11 : i64} {
  func.func @ffn_kernel(%arg0: i32, %arg1: memref<8x32xf32, #tpu.memory_space<vmem>>, %arg2: memref<32x32xf32, #tpu.memory_space<vmem>>, %arg3: memref<1x32xf32, #tpu.memory_space<vmem>>, %arg4: memref<32x16xf32, #tpu.memory_space<vmem>>, %arg5: memref<1x16xf32, #tpu.memory_space<vmem>>, %arg6: memref<8x16xf32, #tpu.memory_space<vmem>>) attributes {dimension_semantics = [#tpu.dimension_semantics<parallel>], iteration_bounds = array<i64: 1>, scalar_prefetch = 0 : i64, scratch_operands = 0 : i64, tpu.core_type = #tpu.core_type<tc>, window_params = [{transform_indices = @transform_0, window_bounds = array<i64: 8, 32>}, {pipeline_mode = #tpu.pipeline_mode<synchronous>, transform_indices = @transform_1, window_bounds = array<i64: 32, 32>}, {pipeline_mode = #tpu.pipeline_mode<synchronous>, transform_indices = @transform_2, window_bounds = array<i64: 1, 32>}, {pipeline_mode = #tpu.pipeline_mode<synchronous>, transform_indices = @transform_3, window_bounds = array<i64: 32, 16>}, {pipeline_mode = #tpu.pipeline_mode<synchronous>, transform_indices = @transform_4, window_bounds = array<i64: 1, 16>}, {transform_indices = @transform_5, window_bounds = array<i64: 8, 16>}]} {
    %c0 = arith.constant 0 : index
    %c0_0 = arith.constant 0 : index
    %0 = vector.load %arg1[%c0, %c0_0] : memref<8x32xf32, #tpu.memory_space<vmem>>, vector<8x32xf32>
    %c0_1 = arith.constant 0 : index
    %c0_2 = arith.constant 0 : index
    %1 = vector.load %arg2[%c0_1, %c0_2] : memref<32x32xf32, #tpu.memory_space<vmem>>, vector<32x32xf32>
    %cst = arith.constant dense<0.000000e+00> : vector<8x32xf32>
    %2 = tpu.matmul %0, %1, %cst {dimension_numbers = #tpu.dot_dimension_numbers<[1], [0], [0], [1], [0, 0, 1, 1], [], []>} : vector<8x32xf32>, vector<32x32xf32>, vector<8x32xf32> -> vector<8x32xf32>
    %c0_3 = arith.constant 0 : index
    %c0_4 = arith.constant 0 : index
    %3 = vector.load %arg3[%c0_3, %c0_4] : memref<1x32xf32, #tpu.memory_space<vmem>>, vector<1x32xf32>
    %4 = vector.broadcast %3 : vector<1x32xf32> to vector<8x32xf32>
    %5 = arith.addf %2, %4 : vector<8x32xf32>
    %cst_5 = arith.constant 0.000000e+00 : f32
    %6 = vector.broadcast %cst_5 : f32 to vector<8x32xf32>
    %7 = arith.maximumf %5, %6 : vector<8x32xf32>
    %c0_6 = arith.constant 0 : index
    %c0_7 = arith.constant 0 : index
    %8 = vector.load %arg4[%c0_6, %c0_7] : memref<32x16xf32, #tpu.memory_space<vmem>>, vector<32x16xf32>
    %cst_8 = arith.constant dense<0.000000e+00> : vector<8x16xf32>
    %9 = tpu.matmul %7, %8, %cst_8 {dimension_numbers = #tpu.dot_dimension_numbers<[1], [0], [0], [1], [0, 0, 1, 1], [], []>} : vector<8x32xf32>, vector<32x16xf32>, vector<8x16xf32> -> vector<8x16xf32>
    %c0_9 = arith.constant 0 : index
    %c0_10 = arith.constant 0 : index
    %10 = vector.load %arg5[%c0_9, %c0_10] : memref<1x16xf32, #tpu.memory_space<vmem>>, vector<1x16xf32>
    %11 = vector.broadcast %10 : vector<1x16xf32> to vector<8x16xf32>
    %12 = arith.addf %9, %11 : vector<8x16xf32>
    %c0_11 = arith.constant 0 : index
    %c0_12 = arith.constant 0 : index
    %13 = vector.load %arg6[%c0_11, %c0_12] : memref<8x16xf32, #tpu.memory_space<vmem>>, vector<8x16xf32>
    tpu.vector_store %arg6[%c0_11, %c0_12], %12 {strides = array<i32>} : memref<8x16xf32, #tpu.memory_space<vmem>>, vector<8x16xf32>,
    return
  }
  func.func @transform_0(%arg0: i32) -> (i32, i32) {
    %c0_i32 = arith.constant 0 : i32
    %c0_i32_0 = arith.constant 0 : i32
    return %arg0, %c0_i32 : i32, i32
  }
  func.func @transform_1(%arg0: i32) -> (i32, i32) {
    %c0_i32 = arith.constant 0 : i32
    %c0_i32_0 = arith.constant 0 : i32
    %c0_i32_1 = arith.constant 0 : i32
    return %c0_i32, %c0_i32_0 : i32, i32
  }
  func.func @transform_2(%arg0: i32) -> (i32, i32) {
    %c0_i32 = arith.constant 0 : i32
    %c0_i32_0 = arith.constant 0 : i32
    %c0_i32_1 = arith.constant 0 : i32
    return %c0_i32, %c0_i32_0 : i32, i32
  }
  func.func @transform_3(%arg0: i32) -> (i32, i32) {
    %c0_i32 = arith.constant 0 : i32
    %c0_i32_0 = arith.constant 0 : i32
    %c0_i32_1 = arith.constant 0 : i32
    return %c0_i32, %c0_i32_0 : i32, i32
  }
  func.func @transform_4(%arg0: i32) -> (i32, i32) {
    %c0_i32 = arith.constant 0 : i32
    %c0_i32_0 = arith.constant 0 : i32
    %c0_i32_1 = arith.constant 0 : i32
    return %c0_i32, %c0_i32_0 : i32, i32
  }
  func.func @transform_5(%arg0: i32) -> (i32, i32) {
    %c0_i32 = arith.constant 0 : i32
    %c0_i32_0 = arith.constant 0 : i32
    return %arg0, %c0_i32 : i32, i32
  }
}

module attributes {stable_mosaic.version = 11 : i64} {
  func.func @ffn_kernel(%arg0: i32, %arg1: memref<8x32xf32, #tpu.memory_space<vmem>>, %arg2: memref<32x32xf32, #tpu.memory_space<vmem>>, %arg3: memref<1x32xf32, #tpu.memory_space<vmem>>, %arg4: memref<32x16xf32, #tpu.memory_space<vmem>>, %arg5: memref<1x16xf32, #tpu.memory_space<vmem>>, %arg6: memref<8x16xf32, #tpu.memory_space<vmem>>) attributes {dimension_semantics = [#tpu.dimension_semantics<parallel>], iteration_bounds = array<i64: 1>, scalar_prefetch = 0 : i64, scratch_operands = 0 : i64, tpu.core_type = #tpu.core_type<tc>, window_params = [{transform_indices = @transform_0, window_bounds = array<i64: 8, 32>}, {pipeline_mode = #tpu.pipeline_mode<synchronous>, transform_indices = @transform_1, window_bounds = array<i64: 32, 32>}, {pipeline_mode = #tpu.pipeline_mode<synchronous>, transform_indices = @transform_2, window_bounds = array<i64: 1, 32>}, {pipeline_mode = #tpu.pipeline_mode<synchronous>, transform_indices = @transform_3, window_bounds = array<i64: 32, 16>}, {pipeline_mode = #tpu.pipeline_mode<synchronous>, transform_indices = @transform_4, window_bounds = array<i64: 1, 16>}, {transform_indices = @transform_5, window_bounds = array<i64: 8, 16>}]} {
    %c0 = arith.constant 0 : index
    %c0_0 = arith.constant 0 : index
    %0 = vector.load %arg1[%c0, %c0_0] : memref<8x32xf32, #tpu.memory_space<vmem>>, vector<8x32xf32>
    %c0_1 = arith.constant 0 : index
    %c0_2 = arith.constant 0 : index
    %1 = vector.load %arg2[%c0_1, %c0_2] : memref<32x32xf32, #tpu.memory_space<vmem>>, vector<32x32xf32>
    %cst = arith.constant dense<0.000000e+00> : vector<8x32xf32>
    %2 = tpu.matmul %0, %1, %cst {dimension_numbers = #tpu.dot_dimension_numbers<[1], [0], [0], [1], [0, 0, 1, 1], [], []>} : vector<8x32xf32>, vector<32x32xf32>, vector<8x32xf32> -> vector<8x32xf32>
    %c0_3 = arith.constant 0 : index
    %c0_4 = arith.constant 0 : index
    %3 = vector.load %arg3[%c0_3, %c0_4] : memref<1x32xf32, #tpu.memory_space<vmem>>, vector<1x32xf32>
    %4 = vector.broadcast %3 : vector<1x32xf32> to vector<8x32xf32>
    %5 = arith.addf %2, %4 : vector<8x32xf32>
    %cst_5 = arith.constant 0.000000e+00 : f32
    %6 = vector.broadcast %cst_5 : f32 to vector<8x32xf32>
    %7 = arith.maximumf %5, %6 : vector<8x32xf32>
    %c0_6 = arith.constant 0 : index
    %c0_7 = arith.constant 0 : index
    %8 = vector.load %arg4[%c0_6, %c0_7] : memref<32x16xf32, #tpu.memory_space<vmem>>, vector<32x16xf32>
    %cst_8 = arith.constant dense<0.000000e+00> : vector<8x16xf32>
    %9 = tpu.matmul %7, %8, %cst_8 {dimension_numbers = #tpu.dot_dimension_numbers<[1], [0], [0], [1], [0, 0, 1, 1], [], []>} : vector<8x32xf32>, vector<32x16xf32>, vector<8x16xf32> -> vector<8x16xf32>
    %c0_9 = arith.constant 0 : index
    %c0_10 = arith.constant 0 : index
    %10 = vector.load %arg5[%c0_9, %c0_10] : memref<1x16xf32, #tpu.memory_space<vmem>>, vector<1x16xf32>
    %11 = vector.broadcast %10 : vector<1x16xf32> to vector<8x16xf32>
    %12 = arith.addf %9, %11 : vector<8x16xf32>
    %c0_11 = arith.constant 0 : index
    %c0_12 = arith.constant 0 : index
    %13 = vector.load %arg6[%c0_11, %c0_12] : memref<8x16xf32, #tpu.memory_space<vmem>>, vector<8x16xf32>
    tpu.vector_store %arg6[%c0_11, %c0_12], %12 {strides = array<i32>} : memref<8x16xf32, #tpu.memory_space<vmem>>, vector<8x16xf32>,
    return
  }
  func.func @transform_0(%arg0: i32) -> (i32, i32) {
    %c0_i32 = arith.constant 0 : i32
    %c0_i32_0 = arith.constant 0 : i32
    return %arg0, %c0_i32 : i32, i32
  }
  func.func @transform_1(%arg0: i32) -> (i32, i32) {
    %c0_i32 = arith.constant 0 : i32
    %c0_i32_0 = arith.constant 0 : i32
    %c0_i32_1 = arith.constant 0 : i32
    return %c0_i32, %c0_i32_0 : i32, i32
  }
  func.func @transform_2(%arg0: i32) -> (i32, i32) {
    %c0_i32 = arith.constant 0 : i32
    %c0_i32_0 = arith.constant 0 : i32
    %c0_i32_1 = arith.constant 0 : i32
    return %c0_i32, %c0_i32_0 : i32, i32
  }
  func.func @transform_3(%arg0: i32) -> (i32, i32) {
    %c0_i32 = arith.constant 0 : i32
    %c0_i32_0 = arith.constant 0 : i32
    %c0_i32_1 = arith.constant 0 : i32
    return %c0_i32, %c0_i32_0 : i32, i32
  }
  func.func @transform_4(%arg0: i32) -> (i32, i32) {
    %c0_i32 = arith.constant 0 : i32
    %c0_i32_0 = arith.constant 0 : i32
    %c0_i32_1 = arith.constant 0 : i32
    return %c0_i32, %c0_i32_0 : i32, i32
  }
  func.func @transform_5(%arg0: i32) -> (i32, i32) {
    %c0_i32 = arith.constant 0 : i32
    %c0_i32_0 = arith.constant 0 : i32
    return %arg0, %c0_i32 : i32, i32
  }
}

</mosaic_0001>

<bundles_post_ra>
// kernel: tpu_custom_call.1
= control target key start
LH: loop header
LB: loop body
LE: loop exit
PB: predicated region body
PF: predicated region fallthrough
CT: control target
= control target key end

     0   :  { %v284_v3 = vmov 0.0|0.0   ;;  %vm285_vm0 = vmmov 0   ;;  %v286_v6 = vmov 0.0   ;;  %s363_s0 = inlined_call_operand.vmem [shape: f32[8,32], index: 0, kind: input, shape index: {}]   ;;  %s364_s1 = inlined_call_operand.vmem [shape: f32[32,32], index: 1, kind: input, shape index: {}]   ;;  %s365_s2 = inlined_call_operand.vmem [shape: f32[1,32], index: 2, kind: input, shape index: {}]   ;;  %s366_s3 = inlined_call_operand.vmem [shape: f32[32,16], index: 3, kind: input, shape index: {}]   ;;  %s367_s4 = inlined_call_operand.vmem [shape: f32[1,16], index: 4, kind: input, shape index: {}]   ;;  %s368_s5 = inlined_call_operand.hbm [shape: f32[8,16], index: 5, kind: output, shape index: {}]  }
   0x1   :  { %v22_v0 = vld [vmem:[%s364_s1] sm:$0xff]  ;;  %v23_v1 = vld [vmem:[%s364_s1 + $0x8] sm:$0xff]  ;;  %v24_v2 = vld [vmem:[%s364_s1 + $0x10] sm:$0xff]  ;;  %244 = vmatprep.subr.bf16.mxu0 %v284_v3  ;;  %230 = vmatprep.mubr.msk.f32.mxu0 %vm285_vm0, %v286_v6 }
   0x2   :  { %v245_v4 = vpack.c.bf16 %v23_v1, %v22_v0  ;;  %v25_v5 = vld [vmem:[%s364_s1 + $0x18] sm:$0xff]  ;;  %v108_v7 = vld [vmem:[%s366_s3] sm:$0xff]  ;;  %250 = vmatprep.subr.bf16.mxu1 %v284_v3  ;;  %v109_v8 = vld [vmem:[%s366_s3 + $0x8] sm:$0xff]  ;;  %241 = vmatprep.mubr.msk.f32.mxu1 %vm285_vm0, %v286_v6 }
   0x3   :  { %10 = vsyncpa [#allocation3], 0  ;;  %v248_v9 = vpack.c.bf16 %v25_v5, %v24_v2  ;;  %v251_v10 = vpack.c.bf16 %v109_v8, %v108_v7  ;;  %v21_v11 = vld [vmem:[%s363_s0] sm:$0xff]  ;;  %vm33_vm1 = vcmask 261120   ;;  %v110_v12 = vld [vmem:[%s366_s3 + $0x10] sm:$0xff]  ;;  %s287_s13 = smov [#allocation2]  }
   0x4   :  { %246 = vmatpush3.bf16.msra.mxu0 %v245_v4  ;;  %v111_v13 = vld [vmem:[%s366_s3 + $0x18] sm:$0xff]  ;;  %v208_v15 = vld [vmem:[%s365_s2] ss:$0 sm:$0xff]  ;;  %s200_s14 = sshll.u32 %s287_s13, 4  ;;  %vm192_vm2 = vcmask 130048   ;;  %s201_s14 = int_to_ptr.vmem [resolvable:$true] %s200_s14 }
   0x5   :  { %247 = vmatprep.subr.bf16.mxu0 %v284_v3  ;;  %252 = vmatpush3.bf16.msra.mxu1 %v251_v10  ;;  %v254_v14 = vpack.c.bf16 %v111_v13, %v110_v12  ;;  %v210_v20 = vld [vmem:[%s367_s4] ss:$0 sm:$0xff]  ;;  %s260_s3 = scalar_lea.vmem %s201_s14, 128  ;;  %p265_p1 = scmp.lt.s32.totalorder %s201_s14, %s201_s14 }
   0x6   :  { %253 = vmatprep.subr.bf16.mxu1 %v284_v3  ;;  %p261_p0 = scmp.ne.s32.totalorder %s201_s14, %s260_s3  ;;  %p266_p2 = scmp.lt.s32.totalorder %s260_s3, %s260_s3 }
   0x8   :  { %249 = vmatpush3.bf16.msra.mxu0 %v248_v9  ;;  %p267_p3 = por %p266_p2, %p265_p1 }
   0x9   :  { %255 = vmatpush3.bf16.msra.mxu1 %v254_v14 }
   0xa   :  { %p268_p4 = pnand %p267_p3, %p261_p0 }
   0xb   :  { %231 = vmatmul.mubr.msk.f32.vlgmr.msra.gmra.mrb[0].mxu0 %vm33_vm1, %v21_v11 }
  0xde   :  { %v103_v16 = vpop.f32.mrb[0].mxu0 }
  0xdf   :  { %v104_v17 = vadd.f32 %v208_v15, %v103_v16  ;;  %v232_v18 = vpop.f32.mrb[1].mxu0 }
  0xe1   :  { %v107_v19 = vmax.f32 %v104_v17, 0.0 }
  0xe3   :  { %242 = vmatmul.mubr.msk.f32.vlgmr.msra.gmra.mrb[0].mxu1 %vm33_vm1, %v107_v19 }
 0x1b6   :  { %v188_v21 = vpop.f32.mrb[0].mxu1 }
 0x1b7   :  { %v189_v22 = vadd.f32 %v210_v20, %v188_v21  ;;  %v243_v23 = vpop.f32.mrb[1].mxu1 }
 0x1b9   :  { %193 = vst.msk [vmem:[#allocation2] sm:$0xff] %vm192_vm2, %v189_v22 }
 0x1ba   :  { %271 = shalt.err (!%p268_p4)
}
 0x1bb   :  { %s272_s16 = scalar_lea.hbm %s368_s5, 128 }
 0x1bc   :  { %p273_p5 = scmp.ne.s32.totalorder %s368_s5, %s272_s16  ;;  %p276_p6 = scmp.lt.u32.totalorder %s272_s16, %s368_s5 }
 0x1be   :  { %p278_p7 = pnand %p276_p6, %p273_p5 }
 0x1c0   :  { %281 = shalt.err (!%p278_p7)
}
 0x1c1   :  { %203 = dma.vmem_to_hbm [thread:$0]  %s201_s14, 128, %s368_s5, [#allocation3]  }
 0x1c2   :  { %282 = dma.done.wait [#allocation3], 128  }
 0x1c3   :  { %283 = vsyncadd [#allocation3], 4294967168 }
 0x1c4   :  { %207 = vsyncpa [#allocation3], 1 }

// kernel: tpu_custom_call.1
= control target key start
LH: loop header
LB: loop body
LE: loop exit
PB: predicated region body
PF: predicated region fallthrough
CT: control target
= control target key end

     0   :  { %v284_v3 = vmov 0.0|0.0   ;;  %vm285_vm0 = vmmov 0   ;;  %v286_v6 = vmov 0.0   ;;  %s363_s0 = inlined_call_operand.vmem [shape: f32[8,32], index: 0, kind: input, shape index: {}]   ;;  %s364_s1 = inlined_call_operand.vmem [shape: f32[32,32], index: 1, kind: input, shape index: {}]   ;;  %s365_s2 = inlined_call_operand.vmem [shape: f32[1,32], index: 2, kind: input, shape index: {}]   ;;  %s366_s3 = inlined_call_operand.vmem [shape: f32[32,16], index: 3, kind: input, shape index: {}]   ;;  %s367_s4 = inlined_call_operand.vmem [shape: f32[1,16], index: 4, kind: input, shape index: {}]   ;;  %s368_s5 = inlined_call_operand.hbm [shape: f32[8,16], index: 5, kind: output, shape index: {}]  }
   0x1   :  { %v22_v0 = vld [vmem:[%s364_s1] sm:$0xff]  ;;  %v23_v1 = vld [vmem:[%s364_s1 + $0x8] sm:$0xff]  ;;  %v24_v2 = vld [vmem:[%s364_s1 + $0x10] sm:$0xff]  ;;  %244 = vmatprep.subr.bf16.mxu0 %v284_v3  ;;  %230 = vmatprep.mubr.msk.f32.mxu0 %vm285_vm0, %v286_v6 }
   0x2   :  { %v245_v4 = vpack.c.bf16 %v23_v1, %v22_v0  ;;  %v25_v5 = vld [vmem:[%s364_s1 + $0x18] sm:$0xff]  ;;  %v108_v7 = vld [vmem:[%s366_s3] sm:$0xff]  ;;  %250 = vmatprep.subr.bf16.mxu1 %v284_v3  ;;  %v109_v8 = vld [vmem:[%s366_s3 + $0x8] sm:$0xff]  ;;  %241 = vmatprep.mubr.msk.f32.mxu1 %vm285_vm0, %v286_v6 }
   0x3   :  { %10 = vsyncpa [#allocation3], 0  ;;  %v248_v9 = vpack.c.bf16 %v25_v5, %v24_v2  ;;  %v251_v10 = vpack.c.bf16 %v109_v8, %v108_v7  ;;  %v21_v11 = vld [vmem:[%s363_s0] sm:$0xff]  ;;  %vm33_vm1 = vcmask 261120   ;;  %v110_v12 = vld [vmem:[%s366_s3 + $0x10] sm:$0xff]  ;;  %s287_s13 = smov [#allocation2]  }
   0x4   :  { %246 = vmatpush3.bf16.msra.mxu0 %v245_v4  ;;  %v111_v13 = vld [vmem:[%s366_s3 + $0x18] sm:$0xff]  ;;  %v208_v15 = vld [vmem:[%s365_s2] ss:$0 sm:$0xff]  ;;  %s200_s14 = sshll.u32 %s287_s13, 4  ;;  %vm192_vm2 = vcmask 130048   ;;  %s201_s14 = int_to_ptr.vmem [resolvable:$true] %s200_s14 }
   0x5   :  { %247 = vmatprep.subr.bf16.mxu0 %v284_v3  ;;  %252 = vmatpush3.bf16.msra.mxu1 %v251_v10  ;;  %v254_v14 = vpack.c.bf16 %v111_v13, %v110_v12  ;;  %v210_v20 = vld [vmem:[%s367_s4] ss:$0 sm:$0xff]  ;;  %s260_s3 = scalar_lea.vmem %s201_s14, 128  ;;  %p265_p1 = scmp.lt.s32.totalorder %s201_s14, %s201_s14 }
   0x6   :  { %253 = vmatprep.subr.bf16.mxu1 %v284_v3  ;;  %p261_p0 = scmp.ne.s32.totalorder %s201_s14, %s260_s3  ;;  %p266_p2 = scmp.lt.s32.totalorder %s260_s3, %s260_s3 }
   0x8   :  { %249 = vmatpush3.bf16.msra.mxu0 %v248_v9  ;;  %p267_p3 = por %p266_p2, %p265_p1 }
   0x9   :  { %255 = vmatpush3.bf16.msra.mxu1 %v254_v14 }
   0xa   :  { %p268_p4 = pnand %p267_p3, %p261_p0 }
   0xb   :  { %231 = vmatmul.mubr.msk.f32.vlgmr.msra.gmra.mrb[0].mxu0 %vm33_vm1, %v21_v11 }
  0xde   :  { %v103_v16 = vpop.f32.mrb[0].mxu0 }
  0xdf   :  { %v104_v17 = vadd.f32 %v208_v15, %v103_v16  ;;  %v232_v18 = vpop.f32.mrb[1].mxu0 }
  0xe1   :  { %v107_v19 = vmax.f32 %v104_v17, 0.0 }
  0xe3   :  { %242 = vmatmul.mubr.msk.f32.vlgmr.msra.gmra.mrb[0].mxu1 %vm33_vm1, %v107_v19 }
 0x1b6   :  { %v188_v21 = vpop.f32.mrb[0].mxu1 }
 0x1b7   :  { %v189_v22 = vadd.f32 %v210_v20, %v188_v21  ;;  %v243_v23 = vpop.f32.mrb[1].mxu1 }
 0x1b9   :  { %193 = vst.msk [vmem:[#allocation2] sm:$0xff] %vm192_vm2, %v189_v22 }
 0x1ba   :  { %271 = shalt.err (!%p268_p4)
}
 0x1bb   :  { %s272_s16 = scalar_lea.hbm %s368_s5, 128 }
 0x1bc   :  { %p273_p5 = scmp.ne.s32.totalorder %s368_s5, %s272_s16  ;;  %p276_p6 = scmp.lt.u32.totalorder %s272_s16, %s368_s5 }
 0x1be   :  { %p278_p7 = pnand %p276_p6, %p273_p5 }
 0x1c0   :  { %281 = shalt.err (!%p278_p7)
}
 0x1c1   :  { %203 = dma.vmem_to_hbm [thread:$0]  %s201_s14, 128, %s368_s5, [#allocation3]  }
 0x1c2   :  { %282 = dma.done.wait [#allocation3], 128  }
 0x1c3   :  { %283 = vsyncadd [#allocation3], 4294967168 }
 0x1c4   :  { %207 = vsyncpa [#allocation3], 1 }

</bundles_post_ra>
